<compile_context>
chip_gen: v5e
topology: v5e:2x2
jax: 0.10.0
libtpu: 0.0.40
codegen_flags: <defaults>
</compile_context>

<pallas_src>
import functools

import jax
import jax.numpy as jnp
from jax.experimental import pallas as pl
from jax.experimental.pallas import tpu as pltpu

KS = 3
PAD = 1
EPS = 1e-5          # BatchNorm1d default eps
LANES = 128


def _round_up(x, m):
    return (x + m - 1) // m * m


def _shift_l(x, offset):
    """y[:, l, :] = x[:, l + offset, :], zero outside [0, L).  Static offset.

    Implemented as (zero halo ++ static slice) so the semantics are exact by
    construction (no wraparound, no masks)."""
    n, l, c = x.shape
    if offset == 0:
        return x
    halo = jnp.zeros((n, abs(offset), c), x.dtype)
    if offset < 0:
        return jnp.concatenate([halo, x[:, :l + offset, :]], axis=1)
    return jnp.concatenate([x[:, offset:, :], halo], axis=1)


def _bn_relu(acc, gamma, beta):
    """Training-mode BatchNorm1d + ReLU, one pass over `acc`.

    acc:   (M, C) f32 conv output (conv bias omitted — it cancels in BN)
    gamma: (1, C) f32, beta: (1, C) f32
    One-pass stats: var = E[x^2] - mean^2, then a single FMA per element.
    Zero-padded channels give mean=var=0 -> scale=0 -> output 0 (no NaNs)."""
    inv_m = 1.0 / acc.shape[0]
    mean = jnp.sum(acc, axis=0, keepdims=True) * inv_m
    mean_sq = jnp.sum(acc * acc, axis=0, keepdims=True) * inv_m
    var = mean_sq - mean * mean
    scale = gamma * jax.lax.rsqrt(var + EPS)
    shift = beta - mean * scale
    return jnp.maximum(acc * scale + shift, 0.0)


def fused_unetconv2_kernel(x_ref, w1_ref, g1_ref, be1_ref,
                           w2_ref, g2_ref, be2_ref, o_ref,
                           *, conv1_im2col):
    # conv1_im2col=True  : x_ref (N, L, KS*Cin) bf16, w1_ref (KS*Cin, Cp) bf16
    # conv1_im2col=False : x_ref (N, L, Cin)    f32 , w1_ref (KS, Cin, Cp) bf16
    # g*/be*: (1, Cp) f32 BN gamma/beta (zero padded above Cout)
    # w2_ref: (KS, Cp, Cp) bf16
    # o_ref : (N, L, Cout) f32 — only valid channels are stored
    N, L = x_ref.shape[0], x_ref.shape[1]
    Cp = w1_ref.shape[-1]
    Cout = o_ref.shape[-1]
    M = N * L

    x = x_ref[...]

    # ---- block 1: Conv1d(ks=3, s=1, p=1) + BN(train) + ReLU ----------------
    if conv1_im2col:
        # Tiny-Cin first block: taps were concatenated in the wrapper, so this
        # is one K = KS*Cin matmul with no in-kernel shuffling of a sparse-lane
        # array.
        acc1 = jnp.dot(x.reshape(M, x.shape[-1]), w1_ref[...],
                       preferred_element_type=jnp.float32)
    else:
        # Wide-Cin block: per-tap accumulation; each tap is an L-shift of the
        # input with a zero halo (K = Cin per matmul).
        acc1 = jnp.zeros((M, Cp), jnp.float32)
        for k in range(KS):                              # static unroll, 3 taps
            tap = _shift_l(x, k - PAD).astype(jnp.bfloat16)
            acc1 = acc1 + jnp.dot(tap.reshape(M, x.shape[-1]), w1_ref[k],
                                  preferred_element_type=jnp.float32)
    h1 = _bn_relu(acc1, g1_ref[...], be1_ref[...])       # (M, Cp) f32
    h1 = h1.reshape(N, L, Cp)

    # ---- block 2: per-tap accumulation (K = Cp per matmul) -----------------
    # No padded staging buffer, no buffer zeroing, no (M, 3*Cp) im2col concat:
    # each tap is an L-shift of h1 (f32 shift -> bf16 cast -> MXU).
    acc2 = jnp.zeros((M, Cp), jnp.float32)
    for k in range(KS):                                  # static unroll, 3 taps
        tap = _shift_l(h1, k - PAD).astype(jnp.bfloat16).reshape(M, Cp)
        acc2 = acc2 + jnp.dot(tap, w2_ref[k],
                              preferred_element_type=jnp.float32)
    h2 = _bn_relu(acc2, g2_ref[...], be2_ref[...])       # (M, Cp) f32

    # Store only the valid channels (masked vst when Cout < 128, unmasked when
    # Cout is a lane multiple) — no wrapper-side pad->slice HBM round trip.
    o_ref[...] = h2.reshape(N, L, Cp)[:, :, :Cout]


@jax.jit
def unet_conv2_forward(x_ncl, params):
    """unetConv2.forward (is_batchnorm=True, n=2): x_ncl is (N, Cin, L) like
    PyTorch; returns (N, Cout, L)."""
    assert len(params) == 2, "fused kernel implements the module default n=2"
    N, Cin, L = x_ncl.shape
    Cout = params[0]['gamma'].shape[0]
    Cp = _round_up(max(Cout, 1), LANES)

    p1, p2 = params
    x_nlc = jnp.transpose(x_ncl, (0, 2, 1))              # NCL -> NLC

    # conv1 weight, out channels zero-padded to a lane multiple Cp.
    w1_3d = jnp.zeros((KS, Cin, Cp), jnp.bfloat16
                      ).at[:, :, :Cout].set(p1['w'].astype(jnp.bfloat16))

    conv1_im2col = Cin < LANES
    if conv1_im2col:
        # Build the (tap, cin)-ordered im2col in the wrapper (tiny arrays for
        # the first block) so the kernel runs a single K = KS*Cin matmul.
        xpad = jnp.pad(x_nlc, ((0, 0), (PAD, PAD), (0, 0)))
        x_in = jnp.concatenate([xpad[:, k:k + L, :] for k in range(KS)],
                               axis=-1).astype(jnp.bfloat16)   # (N, L, KS*Cin)
        w1 = w1_3d.reshape(KS * Cin, Cp)                        # (tap, cin) K
    else:
        x_in = x_nlc.astype(jnp.float32)                        # shift in f32
        w1 = w1_3d

    g1 = jnp.zeros((1, Cp), jnp.float32).at[0, :Cout].set(p1['gamma'])
    be1 = jnp.zeros((1, Cp), jnp.float32).at[0, :Cout].set(p1['beta'])
    w2 = jnp.zeros((KS, Cp, Cp), jnp.bfloat16
                   ).at[:, :Cout, :Cout].set(p2['w'].astype(jnp.bfloat16))
    g2 = jnp.zeros((1, Cp), jnp.float32).at[0, :Cout].set(p2['gamma'])
    be2 = jnp.zeros((1, Cp), jnp.float32).at[0, :Cout].set(p2['beta'])

    # Conv biases (p*['b']) cancel exactly under training-mode BatchNorm and
    # are intentionally not passed to the kernel (see NOTE at top of file).

    operands = (x_in, w1, g1, be1, w2, g2, be2)

    # Explicit VMEM budget (review item): generous headroom over operands,
    # f32 intermediates and output, capped at 64 MiB so it is valid on v7x.
    est = sum(int(a.size) * a.dtype.itemsize for a in operands)
    est += 8 * N * L * Cp * 4 + N * L * Cout * 4
    vmem_limit = int(min(64 * 2**20, max(32 * 2**20, 4 * est)))

    vmem = pltpu.MemorySpace.VMEM
    out_nlc = pl.pallas_call(
        functools.partial(fused_unetconv2_kernel, conv1_im2col=conv1_im2col),
        out_shape=jax.ShapeDtypeStruct((N, L, Cout), jnp.float32),
        in_specs=[pl.BlockSpec(memory_space=vmem)] * len(operands),
        out_specs=pl.BlockSpec(memory_space=vmem),
        compiler_params=pltpu.CompilerParams(vmem_limit_bytes=vmem_limit),
    )(*operands)

    return jnp.transpose(out_nlc, (0, 2, 1))              # NLC -> NCL


def init_params(key, in_size, out_size, n=2, ks=KS):
    """Deterministic init matching the module (kaiming fan_in conv weights,
    default-uniform conv bias, BN gamma~N(1,0.02), BN beta=0)."""
    params = []
    cin = in_size
    for _ in range(n):
        key, kw, kb, kg = jax.random.split(key, 4)
        fan_in = cin * ks
        std = (2.0 / fan_in) ** 0.5
        w_oik = std * jax.random.normal(kw, (out_size, cin, ks), jnp.float32)
        bound = 1.0 / (fan_in ** 0.5)
        b = jax.random.uniform(kb, (out_size,), jnp.float32, -bound, bound)
        gamma = 1.0 + 0.02 * jax.random.normal(kg, (out_size,), jnp.float32)
        beta = jnp.zeros((out_size,), jnp.float32)
        params.append(dict(
            w=jnp.transpose(w_oik, (2, 1, 0)),    # -> (ks, Cin, Cout)
            b=b, gamma=gamma, beta=beta))
        cin = out_size
    return params


def reference_forward(x_ncl, params):
    """Pure-JAX reference mirroring PyTorch Conv1d + BN(train) + ReLU."""
    x = x_ncl
    for p in params:
        w_oik = jnp.transpose(p['w'], (2, 1, 0))  # (Cout, Cin, ks)
        y = jax.lax.conv_general_dilated(
            x, w_oik, window_strides=(1,), padding=[(PAD, PAD)],
            dimension_numbers=('NCH', 'OIH', 'NCH'),
            precision=jax.lax.Precision.HIGHEST)
        y = y + p['b'][None, :, None]
        mean = jnp.mean(y, axis=(0, 2), keepdims=True)
        var = jnp.mean((y - mean) ** 2, axis=(0, 2), keepdims=True)
        y = (y - mean) * jax.lax.rsqrt(var + EPS)
        y = y * p['gamma'][None, :, None] + p['beta'][None, :, None]
        x = jnp.maximum(y, 0.0)
    return x


if __name__ == "__main__":
    key = jax.random.PRNGKey(0)
    kx, kp = jax.random.split(key)

    N, Cin, L, Cout = 2, 4, 16, 8          # small shapes, NCL like PyTorch
    x = jax.random.normal(kx, (N, Cin, L), jnp.float32)
    params = init_params(kp, Cin, Cout, n=2)

    out = jax.block_until_ready(unet_conv2_forward(x, params))
    assert out.shape == (N, Cout, L), out.shape

    ref = reference_forward(x, params)
    if not jnp.allclose(out, ref, atol=2e-2, rtol=2e-2):
        err = float(jnp.max(jnp.abs(out - ref)))
        raise AssertionError(
            f"Pallas kernel output mismatches JAX reference (max abs err {err})")

    print("KERNEL_OK")
</pallas_src>

<mosaic_0001>
module attributes {stable_mosaic.version = 11 : i64} {
  func.func @fused_unetconv2_kernel(%arg0: memref<2x16x12xbf16, #tpu.memory_space<vmem>>, %arg1: memref<12x128xbf16, #tpu.memory_space<vmem>>, %arg2: memref<1x128xf32, #tpu.memory_space<vmem>>, %arg3: memref<1x128xf32, #tpu.memory_space<vmem>>, %arg4: memref<3x128x128xbf16, #tpu.memory_space<vmem>>, %arg5: memref<1x128xf32, #tpu.memory_space<vmem>>, %arg6: memref<1x128xf32, #tpu.memory_space<vmem>>, %arg7: memref<2x16x8xf32, #tpu.memory_space<vmem>>) attributes {dimension_semantics = [], scalar_prefetch = 0 : i64, scratch_operands = 0 : i64, tpu.core_type = #tpu.core_type<tc>} {
    %c0 = arith.constant 0 : index
    %c0_0 = arith.constant 0 : index
    %c0_1 = arith.constant 0 : index
    %0 = vector.load %arg0[%c0, %c0_0, %c0_1] : memref<2x16x12xbf16, #tpu.memory_space<vmem>>, vector<2x16x12xbf16>
    %1 = vector.shape_cast %0 : vector<2x16x12xbf16> to vector<32x12xbf16>
    %c0_2 = arith.constant 0 : index
    %c0_3 = arith.constant 0 : index
    %2 = vector.load %arg1[%c0_2, %c0_3] : memref<12x128xbf16, #tpu.memory_space<vmem>>, vector<12x128xbf16>
    %cst = arith.constant dense<0.000000e+00> : vector<32x128xf32>
    %3 = tpu.matmul %1, %2, %cst {dimension_numbers = #tpu.dot_dimension_numbers<[1], [0], [0], [1], [0, 0, 1, 1], [], []>} : vector<32x12xbf16>, vector<12x128xbf16>, vector<32x128xf32> -> vector<32x128xf32>
    %c0_4 = arith.constant 0 : index
    %c0_5 = arith.constant 0 : index
    %4 = vector.load %arg2[%c0_4, %c0_5] : memref<1x128xf32, #tpu.memory_space<vmem>>, vector<1x128xf32>
    %c0_6 = arith.constant 0 : index
    %c0_7 = arith.constant 0 : index
    %5 = vector.load %arg3[%c0_6, %c0_7] : memref<1x128xf32, #tpu.memory_space<vmem>>, vector<1x128xf32>
    %cst_8 = arith.constant dense<0.000000e+00> : vector<128xf32>
    %6 = vector.multi_reduction <add>, %3, %cst_8 [0] : vector<32x128xf32> to vector<128xf32>
    %7 = vector.shape_cast %6 : vector<128xf32> to vector<1x128xf32>
    %cst_9 = arith.constant 3.125000e-02 : f32
    %8 = vector.broadcast %cst_9 : f32 to vector<1x128xf32>
    %9 = arith.mulf %7, %8 : vector<1x128xf32>
    %10 = arith.mulf %3, %3 : vector<32x128xf32>
    %cst_10 = arith.constant dense<0.000000e+00> : vector<128xf32>
    %11 = vector.multi_reduction <add>, %10, %cst_10 [0] : vector<32x128xf32> to vector<128xf32>
    %12 = vector.shape_cast %11 : vector<128xf32> to vector<1x128xf32>
    %cst_11 = arith.constant 3.125000e-02 : f32
    %13 = vector.broadcast %cst_11 : f32 to vector<1x128xf32>
    %14 = arith.mulf %12, %13 : vector<1x128xf32>
    %15 = arith.mulf %9, %9 : vector<1x128xf32>
    %16 = arith.subf %14, %15 : vector<1x128xf32>
    %cst_12 = arith.constant 9.99999974E-6 : f32
    %17 = vector.broadcast %cst_12 : f32 to vector<1x128xf32>
    %18 = arith.addf %16, %17 : vector<1x128xf32>
    %19 = math.rsqrt %18 : vector<1x128xf32>
    %20 = arith.mulf %4, %19 : vector<1x128xf32>
    %21 = arith.mulf %9, %20 : vector<1x128xf32>
    %22 = arith.subf %5, %21 : vector<1x128xf32>
    %23 = vector.broadcast %20 : vector<1x128xf32> to vector<32x128xf32>
    %24 = arith.mulf %3, %23 : vector<32x128xf32>
    %25 = vector.broadcast %22 : vector<1x128xf32> to vector<32x128xf32>
    %26 = arith.addf %24, %25 : vector<32x128xf32>
    %cst_13 = arith.constant 0.000000e+00 : f32
    %27 = vector.broadcast %cst_13 : f32 to vector<32x128xf32>
    %28 = arith.maximumf %26, %27 : vector<32x128xf32>
    %29 = vector.shape_cast %28 : vector<32x128xf32> to vector<2x16x128xf32>
    %cst_14 = arith.constant 0.000000e+00 : f32
    %30 = vector.broadcast %cst_14 : f32 to vector<32x128xf32>
    %cst_15 = arith.constant 0.000000e+00 : f32
    %31 = vector.broadcast %cst_15 : f32 to vector<2x1x128xf32>
    %32 = vector.extract_strided_slice %29 {offsets = [0, 0, 0], sizes = [2, 15, 128], strides = [1, 1, 1]} : vector<2x16x128xf32> to vector<2x15x128xf32>
    %33 = tpu.concatenate %31, %32 in 1 : vector<2x1x128xf32>, vector<2x15x128xf32> -> vector<2x16x128xf32>
    %34 = arith.truncf %33 : vector<2x16x128xf32> to vector<2x16x128xbf16>
    %35 = vector.shape_cast %34 : vector<2x16x128xbf16> to vector<32x128xbf16>
    %c0_16 = arith.constant 0 : index
    %c0_17 = arith.constant 0 : index
    %c0_18 = arith.constant 0 : index
    %36 = vector.load %arg4[%c0_16, %c0_17, %c0_18] : memref<3x128x128xbf16, #tpu.memory_space<vmem>>, vector<1x128x128xbf16>
    %37 = vector.shape_cast %36 : vector<1x128x128xbf16> to vector<128x128xbf16>
    %cst_19 = arith.constant dense<0.000000e+00> : vector<32x128xf32>
    %38 = tpu.matmul %35, %37, %cst_19 {dimension_numbers = #tpu.dot_dimension_numbers<[1], [0], [0], [1], [0, 0, 1, 1], [], []>} : vector<32x128xbf16>, vector<128x128xbf16>, vector<32x128xf32> -> vector<32x128xf32>
    %39 = arith.addf %30, %38 : vector<32x128xf32>
    %40 = arith.truncf %29 : vector<2x16x128xf32> to vector<2x16x128xbf16>
    %41 = vector.shape_cast %40 : vector<2x16x128xbf16> to vector<32x128xbf16>
    %c1 = arith.constant 1 : index
    %c0_20 = arith.constant 0 : index
    %c0_21 = arith.constant 0 : index
    %42 = vector.load %arg4[%c1, %c0_20, %c0_21] : memref<3x128x128xbf16, #tpu.memory_space<vmem>>, vector<1x128x128xbf16>
    %43 = vector.shape_cast %42 : vector<1x128x128xbf16> to vector<128x128xbf16>
    %cst_22 = arith.constant dense<0.000000e+00> : vector<32x128xf32>
    %44 = tpu.matmul %41, %43, %cst_22 {dimension_numbers = #tpu.dot_dimension_numbers<[1], [0], [0], [1], [0, 0, 1, 1], [], []>} : vector<32x128xbf16>, vector<128x128xbf16>, vector<32x128xf32> -> vector<32x128xf32>
    %45 = arith.addf %39, %44 : vector<32x128xf32>
    %cst_23 = arith.constant 0.000000e+00 : f32
    %46 = vector.broadcast %cst_23 : f32 to vector<2x1x128xf32>
    %47 = vector.extract_strided_slice %29 {offsets = [0, 1, 0], sizes = [2, 15, 128], strides = [1, 1, 1]} : vector<2x16x128xf32> to vector<2x15x128xf32>
    %48 = tpu.concatenate %47, %46 in 1 : vector<2x15x128xf32>, vector<2x1x128xf32> -> vector<2x16x128xf32>
    %49 = arith.truncf %48 : vector<2x16x128xf32> to vector<2x16x128xbf16>
    %50 = vector.shape_cast %49 : vector<2x16x128xbf16> to vector<32x128xbf16>
    %c2 = arith.constant 2 : index
    %c0_24 = arith.constant 0 : index
    %c0_25 = arith.constant 0 : index
    %51 = vector.load %arg4[%c2, %c0_24, %c0_25] : memref<3x128x128xbf16, #tpu.memory_space<vmem>>, vector<1x128x128xbf16>
    %52 = vector.shape_cast %51 : vector<1x128x128xbf16> to vector<128x128xbf16>
    %cst_26 = arith.constant dense<0.000000e+00> : vector<32x128xf32>
    %53 = tpu.matmul %50, %52, %cst_26 {dimension_numbers = #tpu.dot_dimension_numbers<[1], [0], [0], [1], [0, 0, 1, 1], [], []>} : vector<32x128xbf16>, vector<128x128xbf16>, vector<32x128xf32> -> vector<32x128xf32>
    %54 = arith.addf %45, %53 : vector<32x128xf32>
    %c0_27 = arith.constant 0 : index
    %c0_28 = arith.constant 0 : index
    %55 = vector.load %arg5[%c0_27, %c0_28] : memref<1x128xf32, #tpu.memory_space<vmem>>, vector<1x128xf32>
    %c0_29 = arith.constant 0 : index
    %c0_30 = arith.constant 0 : index
    %56 = vector.load %arg6[%c0_29, %c0_30] : memref<1x128xf32, #tpu.memory_space<vmem>>, vector<1x128xf32>
    %cst_31 = arith.constant dense<0.000000e+00> : vector<128xf32>
    %57 = vector.multi_reduction <add>, %54, %cst_31 [0] : vector<32x128xf32> to vector<128xf32>
    %58 = vector.shape_cast %57 : vector<128xf32> to vector<1x128xf32>
    %cst_32 = arith.constant 3.125000e-02 : f32
    %59 = vector.broadcast %cst_32 : f32 to vector<1x128xf32>
    %60 = arith.mulf %58, %59 : vector<1x128xf32>
    %61 = arith.mulf %54, %54 : vector<32x128xf32>
    %cst_33 = arith.constant dense<0.000000e+00> : vector<128xf32>
    %62 = vector.multi_reduction <add>, %61, %cst_33 [0] : vector<32x128xf32> to vector<128xf32>
    %63 = vector.shape_cast %62 : vector<128xf32> to vector<1x128xf32>
    %cst_34 = arith.constant 3.125000e-02 : f32
    %64 = vector.broadcast %cst_34 : f32 to vector<1x128xf32>
    %65 = arith.mulf %63, %64 : vector<1x128xf32>
    %66 = arith.mulf %60, %60 : vector<1x128xf32>
    %67 = arith.subf %65, %66 : vector<1x128xf32>
    %cst_35 = arith.constant 9.99999974E-6 : f32
    %68 = vector.broadcast %cst_35 : f32 to vector<1x128xf32>
    %69 = arith.addf %67, %68 : vector<1x128xf32>
    %70 = math.rsqrt %69 : vector<1x128xf32>
    %71 = arith.mulf %55, %70 : vector<1x128xf32>
    %72 = arith.mulf %60, %71 : vector<1x128xf32>
    %73 = arith.subf %56, %72 : vector<1x128xf32>
    %74 = vector.broadcast %71 : vector<1x128xf32> to vector<32x128xf32>
    %75 = arith.mulf %54, %74 : vector<32x128xf32>
    %76 = vector.broadcast %73 : vector<1x128xf32> to vector<32x128xf32>
    %77 = arith.addf %75, %76 : vector<32x128xf32>
    %cst_36 = arith.constant 0.000000e+00 : f32
    %78 = vector.broadcast %cst_36 : f32 to vector<32x128xf32>
    %79 = arith.maximumf %77, %78 : vector<32x128xf32>
    %80 = vector.shape_cast %79 : vector<32x128xf32> to vector<2x16x128xf32>
    %81 = vector.extract_strided_slice %80 {offsets = [0, 0, 0], sizes = [2, 16, 8], strides = [1, 1, 1]} : vector<2x16x128xf32> to vector<2x16x8xf32>
    %c0_37 = arith.constant 0 : index
    %c0_38 = arith.constant 0 : index
    %c0_39 = arith.constant 0 : index
    %82 = vector.load %arg7[%c0_37, %c0_38, %c0_39] : memref<2x16x8xf32, #tpu.memory_space<vmem>>, vector<2x16x8xf32>
    tpu.vector_store %arg7[%c0_37, %c0_38, %c0_39], %81 {strides = array<i32>} : memref<2x16x8xf32, #tpu.memory_space<vmem>>, vector<2x16x8xf32>,
    return
  }
}

</mosaic_0001>

<bundles_post_ra>
// kernel: unet_conv2_forward.1
= control target key start
LH: loop header
LB: loop body
LE: loop exit
PB: predicated region body
PF: predicated region fallthrough
CT: control target
= control target key end

     0   :  { %vm55_vm0 = vcmask 1045504   ;;  %vm48_vm1 = vcmask 97280   ;;  %vm142_vm5 = vcmask 1040384   ;;  %vm354_vm6 = vcmask 1046528   ;;  %s901_s1 = inlined_call_operand.vmem [shape: bf16[12,128], index: 1, kind: input, shape index: {}]   ;;  %s902_s0 = inlined_call_operand.vmem [shape: bf16[2,16,12], index: 0, kind: input, shape index: {}]   ;;  %s903_s4 = inlined_call_operand.vmem [shape: bf16[3,128,128], index: 4, kind: input, shape index: {}]   ;;  %s904_s2 = inlined_call_operand.vmem [shape: f32[1,128], index: 2, kind: input, shape index: {}]   ;;  %s905_s3 = inlined_call_operand.vmem [shape: f32[1,128], index: 3, kind: input, shape index: {}]   ;;  %s906_s5 = inlined_call_operand.vmem [shape: f32[1,128], index: 5, kind: input, shape index: {}]   ;;  %s907_s6 = inlined_call_operand.vmem [shape: f32[1,128], index: 6, kind: input, shape index: {}]   ;;  %s908_s7 = inlined_call_operand.vmem [shape: f32[2,16,8], index: 7, kind: output, shape index: {}]  }
   0x1   :  { %v550_v0 = vld [vmem:[%s901_s1] sm:$0xf]  ;;  %v684_v1 = vld [vmem:[%s901_s1] sm:$0x30]  ;;  %v683_v5 = vld [vmem:[%s902_s0 + $0x8] sm:$0xff]  ;;  %vm531_vm10 = vcmask 64512  }
   0x2   :  { %v551_v2 = vor.u32 %v684_v1, %v550_v0  ;;  %v682_v4 = vld [vmem:[%s902_s0] sm:$0xff]  ;;  %v700_v9 = vld [vmem:[%s903_s4 + $0x78] sm:$0xff]  ;;  %v699_v16 = vld [vmem:[%s903_s4 + $0x70] sm:$0xff] }
   0x3   :  { %709 = vmatpush.bf16.msra.mxu1 %v700_v9  ;;  %v692_v14 = vld [vmem:[%s903_s4 + $0x38] sm:$0xff]  ;;  %v691_v23 = vld [vmem:[%s903_s4 + $0x30] sm:$0xff]  ;;  %v698_v25 = vld [vmem:[%s903_s4 + $0x68] sm:$0xff] }
   0x4   :  { %v57_v3 = vsel %vm55_vm0, %v551_v2, 0  ;;  %v708_v15 = vld [vmem:[%s903_s4 + $0xb8] sm:$0xff]  ;;  %335 = vmatpush.bf16.msra.mxu2 %v692_v14  ;;  %v707_v24 = vld [vmem:[%s903_s4 + $0xb0] sm:$0xff]  ;;  %v690_v30 = vld [vmem:[%s903_s4 + $0x28] sm:$0xff] }
   0x5   :  { %66 = vmatpush.bf16.msra.mxu0 %v57_v3  ;;  %448 = vmatpush.bf16.msra.mxu3 %v708_v15  ;;  %v706_v31 = vld [vmem:[%s903_s4 + $0xa8] sm:$0xff]  ;;  %v697_v32 = vld [vmem:[%s903_s4 + $0x60] sm:$0xff]  ;;  %v696_v39 = vld [vmem:[%s903_s4 + $0x58] sm:$0xff] }
   0x6   :  { %v689_v37 = vld [vmem:[%s903_s4 + $0x20] sm:$0xff]  ;;  %v688_v44 = vld [vmem:[%s903_s4 + $0x18] sm:$0xff]  ;;  %v695_v46 = vld [vmem:[%s903_s4 + $0x50] sm:$0xff] }
   0x7   :  { %710 = vmatpush.bf16.msra.mxu1 %v699_v16  ;;  %v705_v38 = vld [vmem:[%s903_s4 + $0xa0] sm:$0xff]  ;;  %v704_v45 = vld [vmem:[%s903_s4 + $0x98] sm:$0xff]  ;;  %v687_v51 = vld [vmem:[%s903_s4 + $0x10] sm:$0xff] }
   0x8   :  { %552 = vmatmul.msk.bf16.vlgmr.msra.gmra.mxu0 %vm48_vm1, %v682_v4  ;;  %336 = vmatpush.bf16.msra.mxu2 %v691_v23  ;;  %v703_v52 = vld [vmem:[%s903_s4 + $0x90] sm:$0xff]  ;;  %v694_v53 = vld [vmem:[%s903_s4 + $0x48] sm:$0xff]  ;;  %v693_v57 = vld [vmem:[%s903_s4 + $0x40] sm:$0xff] }
   0x9   :  { %256 = vmatpush.bf16.msrb.mxu0 %v700_v9  ;;  %449 = vmatpush.bf16.msra.mxu3 %v707_v24  ;;  %v686_v55 = vld [vmem:[%s903_s4 + $0x8] sm:$0xff]  ;;  %v685_v59 = vld [vmem:[%s903_s4] sm:$0xff] }
   0xa   :  { %v702_v56 = vld [vmem:[%s903_s4 + $0x88] sm:$0xff]  ;;  %v701_v60 = vld [vmem:[%s903_s4 + $0x80] sm:$0xff] }
   0xb   :  { %711 = vmatpush.bf16.msra.mxu1 %v698_v25  ;;  %v78_v2 = vld [vmem:[%s904_s2] sm:$0x1] }
   0xc   :  { %337 = vmatpush.bf16.msra.mxu2 %v690_v30  ;;  %v79_v9 = vld [vmem:[%s905_s3] sm:$0x1] }
   0xd   :  { %257 = vmatpush.bf16.msrb.mxu0 %v699_v16  ;;  %450 = vmatpush.bf16.msra.mxu3 %v706_v31 }
   0xf   :  { %712 = vmatpush.bf16.msra.mxu1 %v697_v32 }
  0x10   :  { %338 = vmatpush.bf16.msra.mxu2 %v689_v37 }
  0x11   :  { %258 = vmatpush.bf16.msrb.mxu0 %v698_v25  ;;  %451 = vmatpush.bf16.msra.mxu3 %v705_v38 }
  0x13   :  { %713 = vmatpush.bf16.msra.mxu1 %v696_v39 }
  0x14   :  { %339 = vmatpush.bf16.msra.mxu2 %v688_v44 }
  0x15   :  { %259 = vmatpush.bf16.msrb.mxu0 %v697_v32  ;;  %452 = vmatpush.bf16.msra.mxu3 %v704_v45 }
  0x17   :  { %714 = vmatpush.bf16.msra.mxu1 %v695_v46 }
  0x18   :  { %553 = vmatmul.msk.bf16.gmra.mxu0 %vm48_vm1, %v683_v5  ;;  %340 = vmatpush.bf16.msra.mxu2 %v687_v51 }
  0x19   :  { %260 = vmatpush.bf16.msrb.mxu0 %v696_v39  ;;  %453 = vmatpush.bf16.msra.mxu3 %v703_v52 }
  0x1b   :  { %715 = vmatpush.bf16.msra.mxu1 %v694_v53 }
  0x1c   :  { %341 = vmatpush.bf16.msra.mxu2 %v686_v55 }
  0x1d   :  { %261 = vmatpush.bf16.msrb.mxu0 %v695_v46  ;;  %454 = vmatpush.bf16.msra.mxu3 %v702_v56 }
  0x1f   :  { %716 = vmatpush.bf16.msra.mxu1 %v693_v57 }
  0x20   :  { %342 = vmatpush.bf16.msra.mxu2 %v685_v59 }
  0x21   :  { %262 = vmatpush.bf16.msrb.mxu0 %v694_v53  ;;  %455 = vmatpush.bf16.msra.mxu3 %v701_v60 }
  0x25   :  { %263 = vmatpush.bf16.msrb.mxu0 %v693_v57 }
  0x85   :  { %v773_v6 = vpop.f32.mrf.mxu0 }
  0x86   :  { %v90_v11 = vmul.f32 %v773_v6, %v773_v6 }
  0x8d   :  { %v775_v7 = vpop.f32.mrf.mxu0 }
  0x8e   :  { %v91_v10 = vmul.f32 %v775_v7, %v775_v7  ;;  %v80_v12 = vadd.f32 %v775_v7, %v773_v6 }
  0x90   :  { %v94_v17 = vadd.f32 %v91_v10, %v90_v11 }
  0x95   :  { %v777_v8 = vpop.f32.mrf.mxu0 }
  0x96   :  { %v92_v13 = vmul.f32 %v777_v8, %v777_v8  ;;  %v81_v18 = vadd.f32 %v80_v12, %v777_v8 }
  0x98   :  { %v95_v20 = vadd.f32 %v94_v17, %v92_v13 }
  0x9d   :  { %v800_v19 = vpop.f32.mrf.mxu0 }
  0x9e   :  { %v82_v21 = vadd.f32 %v81_v18, %v800_v19  ;;  %v93_v22 = vmul.f32 %v800_v19, %v800_v19 }
  0xa0   :  { %v83_v26 = vrot.slane %v82_v21, 4  ;;  %v96_v27 = vadd.f32 %v95_v20, %v93_v22 }
  0xa2   :  { %v84_v28 = vadd.f32 %v83_v26, %v82_v21  ;;  %v97_v29 = vrot.slane %v96_v27, 4 }
  0xa4   :  { %v85_v33 = vrot.slane %v84_v28, 2  ;;  %v98_v34 = vadd.f32 %v97_v29, %v96_v27 }
  0xa6   :  { %v86_v35 = vadd.f32 %v85_v33, %v84_v28  ;;  %v99_v36 = vrot.slane %v98_v34, 2 }
  0xa8   :  { %v87_v40 = vrot.slane %v86_v35, 1  ;;  %v100_v41 = vadd.f32 %v99_v36, %v98_v34 }
  0xaa   :  { %v88_v42 = vadd.f32 %v87_v40, %v86_v35  ;;  %v101_v43 = vrot.slane %v100_v41, 1 }
  0xac   :  { %v89_v47 = vmul.f32 0.03125, %v88_v42  ;;  %v102_v48 = vadd.f32 %v101_v43, %v100_v41 }
  0xae   :  { %v103_v49 = vmul.f32 0.03125, %v102_v48  ;;  %v104_v50 = vmul.f32 %v89_v47, %v89_v47 }
  0xb0   :  { %v105_v54 = vsub.f32 %v103_v49, %v104_v50 }
  0xb2   :  { %v106_v58 = vadd.f32 1e-05, %v105_v54 }
  0xb4   :  { %717 = vrsqrt.f32 %v106_v58  ;;  %vm113_vm3 = vweird.f32 %v106_v58 }
  0xba   :  { %v718_v61 = vpop.eup %717 }
  0xbb   :  { %v108_v62 = vmul.f32 %v718_v61, %v106_v58  ;;  %vm114_vm2 = vweird.f32 %v718_v61 }
  0xbc   :  { %vm115_vm4 = vmor %vm113_vm3, %vm114_vm2 }
  0xbd   :  { %v109_v63 = vmul.f32 %v718_v61, %v108_v62 }
  0xbf   :  { %v110_v0 = vmul.f32 0.5, %v109_v63 }
  0xc1   :  { %v111_v1 = vsub.f32 1.5, %v110_v0 }
  0xc3   :  { %v112_v3 = vmul.f32 %v718_v61, %v111_v1 }
  0xc5   :  { %v116_v4 = vsel %vm115_vm4, %v718_v61, %v112_v3 }
  0xc6   :  { %v117_v5 = vmul.f32 %v116_v4, %v78_v2 }
  0xc8   :  { %v118_v10 = vmul.f32 %v117_v5, %v89_v47  ;;  %v121_v11 = vperm.slane %v117_v5, 0 }
  0xca   :  { %v119_v12 = vsub.f32 %v79_v9, %v118_v10  ;;  %v126_v13 = vmul.f32 %v121_v11, %v800_v19  ;;  %v123_v15 = vmul.f32 %v121_v11, %v773_v6  ;;  %v124_v16 = vmul.f32 %v121_v11, %v775_v7 }
  0xcb   :  { %v125_v17 = vmul.f32 %v121_v11, %v777_v8 }
  0xcc   :  { %v128_v14 = vperm.slane %v119_v12, 0 }
  0xce   :  { %v133_v18 = vadd.f32 %v128_v14, %v126_v13  ;;  %v130_v20 = vadd.f32 %v128_v14, %v123_v15  ;;  %v131_v21 = vadd.f32 %v128_v14, %v124_v16  ;;  %v132_v22 = vadd.f32 %v128_v14, %v125_v17 }
  0xd0   :  { %v137_v23 = vmax.f32 %v133_v18, 0.0  ;;  %v134_v24 = vmax.f32 %v130_v20, 0.0  ;;  %v135_v25 = vmax.f32 %v131_v21, 0.0  ;;  %v136_v26 = vmax.f32 %v132_v22, 0.0 }
  0xd2   :  { %v175_v27 = vpack.c.bf16 %v134_v24, %v134_v24  ;;  %v176_v28 = vpack.c.bf16 %v135_v25, %v135_v25  ;;  %v177_v19 = vpack.c.bf16 %v136_v26, %v136_v26  ;;  %v178_v29 = vpack.c.bf16 %v137_v23, %v137_v23 }
  0xd3   :  { %v143_v30 = vrot.slane %v134_v24, 7  ;;  %v144_v6 = vrot.slane %v135_v25, 7  ;;  %v355_v31 = vrot.slane %v134_v24, 1  ;;  %v356_v7 = vrot.slane %v135_v25, 1 }
  0xd4   :  { %v200_v32 = vunpack.c.l.b16 %v175_v27  ;;  %v201_v8 = vunpack.c.l.b16 %v176_v28  ;;  %v202_v33 = vunpack.c.l.b16 %v177_v19  ;;  %v203_v34 = vunpack.c.l.b16 %v178_v29 }
  0xd5   :  { %v145_v35 = vsel %vm142_vm5, %v143_v30, %v144_v6  ;;  %v153_v36 = vsel %vm142_vm5, 0.0, %v143_v30  ;;  %v357_v37 = vsel %vm354_vm6, %v355_v31, %v356_v7  ;;  %v365_v38 = vsel %vm354_vm6, %v356_v7, 0.0 }
  0xd6   :  { %v204_v39 = vpack.c.b16 %v201_v8, %v200_v32  ;;  %v205_v40 = vpack.c.b16 %v203_v34, %v202_v33  ;;  %v155_v41 = vpack.c.bf16 %v153_v36, %v153_v36  ;;  %v156_v42 = vpack.c.bf16 %v145_v35, %v145_v35 }
  0xd7   :  { %v367_v43 = vpack.c.bf16 %v357_v37, %v357_v37  ;;  %v368_v44 = vpack.c.bf16 %v365_v38, %v365_v38  ;;  %v146_v51 = vrot.slane %v136_v26, 7  ;;  %v147_v52 = vrot.slane %v137_v23, 7 }
  0xd8   :  { %264 = vmatmul.bf16.vlgmr.msrb.gmra.mxu0 %v204_v39  ;;  %269 = vmatmul.bf16.vlgmr.msra.gmra.mxu1 %v205_v40  ;;  %v279_v45 = vunpack.c.l.b16 %v155_v41  ;;  %v280_v46 = vunpack.c.l.b16 %v156_v42  ;;  %v358_v53 = vrot.slane %v136_v26, 1  ;;  %v359_v54 = vrot.slane %v137_v23, 1 }
  0xd9   :  { %v392_v47 = vunpack.c.l.b16 %v367_v43  ;;  %v393_v48 = vunpack.c.l.b16 %v368_v44  ;;  %v148_v55 = vsel %vm142_vm5, %v146_v51, %v147_v52  ;;  %v154_v56 = vsel %vm142_vm5, 0.0, %v146_v51 }
  0xda   :  { %v283_v49 = vpack.c.b16 %v280_v46, %v279_v45  ;;  %v360_v57 = vsel %vm354_vm6, %v358_v53, %v359_v54  ;;  %v366_v58 = vsel %vm354_vm6, %v359_v54, 0.0  ;;  %v157_v59 = vpack.c.bf16 %v154_v56, %v154_v56 }
  0xdb   :  { %v396_v50 = vpack.c.b16 %v393_v48, %v392_v47  ;;  %v158_v60 = vpack.c.bf16 %v148_v55, %v148_v55  ;;  %v369_v61 = vpack.c.bf16 %v360_v57, %v360_v57  ;;  %v370_v62 = vpack.c.bf16 %v366_v58, %v366_v58  ;;  %v471_v57 = vld [vmem:[%s906_s5] sm:$0x1] }
  0xdc   :  { %343 = vmatmul.bf16.vlgmr.msra.gmra.mxu2 %v283_v49  ;;  %v281_v63 = vunpack.c.l.b16 %v157_v59 }
  0xdd   :  { %456 = vmatmul.bf16.vlgmr.msra.gmra.mxu3 %v396_v50  ;;  %v282_v0 = vunpack.c.l.b16 %v158_v60  ;;  %v394_v1 = vunpack.c.l.b16 %v369_v61  ;;  %v395_v2 = vunpack.c.l.b16 %v370_v62  ;;  %v472_v61 = vld [vmem:[%s907_s6] sm:$0x1] }
  0xdf   :  { %v284_v3 = vpack.c.b16 %v282_v0, %v281_v63  ;;  %v397_v4 = vpack.c.b16 %v395_v2, %v394_v1 }
  0xec   :  { %348 = vmatmul.bf16.gmra.mxu2 %v284_v3 }
  0xed   :  { %461 = vmatmul.bf16.gmra.mxu3 %v397_v4 }
 0x155   :  { %v265_v10 = vpop.f32.mrf.mxu0  ;;  %v270_v13 = vpop.f32.mrf.mxu1 }
 0x15d   :  { %v267_v14 = vpop.f32.mrf.mxu0  ;;  %v272_v25 = vpop.f32.mrf.mxu1 }
 0x15f   :  { %v344_v5 = vpop.f32.mrf.mxu2 }
 0x160   :  { %v457_v9 = vpop.f32.mrf.mxu3  ;;  %v345_v17 = vadd.f32 %v344_v5, %v265_v10 }
 0x162   :  { %v467_v22 = vadd.f32 %v457_v9, %v345_v17 }
 0x164   :  { %v483_v27 = vmul.f32 %v467_v22, %v467_v22 }
 0x167   :  { %v346_v11 = vpop.f32.mrf.mxu2 }
 0x168   :  { %v459_v12 = vpop.f32.mrf.mxu3  ;;  %v347_v15 = vadd.f32 %v346_v11, %v267_v14 }
 0x16a   :  { %v468_v21 = vadd.f32 %v459_v12, %v347_v15 }
 0x16c   :  { %v484_v24 = vmul.f32 %v468_v21, %v468_v21  ;;  %v473_v28 = vadd.f32 %v468_v21, %v467_v22 }
 0x16e   :  { %v487_v6 = vadd.f32 %v484_v24, %v483_v27 }
 0x16f   :  { %v349_v16 = vpop.f32.mrf.mxu2 }
 0x170   :  { %v350_v18 = vadd.f32 %v349_v16, %v270_v13  ;;  %v462_v20 = vpop.f32.mrf.mxu3 }
 0x172   :  { %v469_v23 = vadd.f32 %v462_v20, %v350_v18 }
 0x174   :  { %v485_v19 = vmul.f32 %v469_v23, %v469_v23  ;;  %v474_v31 = vadd.f32 %v473_v28, %v469_v23 }
 0x176   :  { %v488_v32 = vadd.f32 %v487_v6, %v485_v19 }
 0x177   :  { %v351_v26 = vpop.f32.mrf.mxu2 }
 0x178   :  { %v352_v29 = vadd.f32 %v351_v26, %v272_v25  ;;  %v464_v30 = vpop.f32.mrf.mxu3 }
 0x17a   :  { %v470_v7 = vadd.f32 %v464_v30, %v352_v29 }
 0x17c   :  { %v475_v8 = vadd.f32 %v474_v31, %v470_v7  ;;  %v486_v33 = vmul.f32 %v470_v7, %v470_v7 }
 0x17e   :  { %v476_v34 = vrot.slane %v475_v8, 4  ;;  %v489_v35 = vadd.f32 %v488_v32, %v486_v33 }
 0x180   :  { %v477_v36 = vadd.f32 %v476_v34, %v475_v8  ;;  %v490_v37 = vrot.slane %v489_v35, 4 }
 0x182   :  { %v478_v38 = vrot.slane %v477_v36, 2  ;;  %v491_v39 = vadd.f32 %v490_v37, %v489_v35 }
 0x184   :  { %v479_v40 = vadd.f32 %v478_v38, %v477_v36  ;;  %v492_v41 = vrot.slane %v491_v39, 2 }
 0x186   :  { %v480_v42 = vrot.slane %v479_v40, 1  ;;  %v493_v43 = vadd.f32 %v492_v41, %v491_v39 }
 0x188   :  { %v481_v44 = vadd.f32 %v480_v42, %v479_v40  ;;  %v494_v45 = vrot.slane %v493_v43, 1 }
 0x18a   :  { %v482_v46 = vmul.f32 0.03125, %v481_v44  ;;  %v495_v47 = vadd.f32 %v494_v45, %v493_v43 }
 0x18c   :  { %v496_v48 = vmul.f32 0.03125, %v495_v47  ;;  %v497_v49 = vmul.f32 %v482_v46, %v482_v46 }
 0x18e   :  { %v498_v50 = vsub.f32 %v496_v48, %v497_v49 }
 0x190   :  { %v499_v51 = vadd.f32 1e-05, %v498_v50 }
 0x192   :  { %719 = vrsqrt.f32 %v499_v51  ;;  %vm506_vm8 = vweird.f32 %v499_v51 }
 0x198   :  { %v720_v52 = vpop.eup %719 }
 0x199   :  { %v501_v53 = vmul.f32 %v720_v52, %v499_v51  ;;  %vm507_vm7 = vweird.f32 %v720_v52 }
 0x19a   :  { %vm508_vm9 = vmor %vm506_vm8, %vm507_vm7 }
 0x19b   :  { %v502_v54 = vmul.f32 %v720_v52, %v501_v53 }
 0x19d   :  { %v503_v55 = vmul.f32 0.5, %v502_v54 }
 0x19f   :  { %v504_v56 = vsub.f32 1.5, %v503_v55 }
 0x1a1   :  { %v505_v58 = vmul.f32 %v720_v52, %v504_v56 }
 0x1a3   :  { %v509_v59 = vsel %vm508_vm9, %v720_v52, %v505_v58 }
 0x1a4   :  { %v510_v60 = vmul.f32 %v509_v59, %v471_v57 }
 0x1a6   :  { %v511_v62 = vmul.f32 %v510_v60, %v482_v46  ;;  %v514_v63 = vperm.slane %v510_v60, 0 }
 0x1a8   :  { %v512_v0 = vsub.f32 %v472_v61, %v511_v62  ;;  %v516_v1 = vmul.f32 %v514_v63, %v467_v22  ;;  %v517_v2 = vmul.f32 %v514_v63, %v468_v21  ;;  %v518_v3 = vmul.f32 %v514_v63, %v469_v23 }
 0x1a9   :  { %v519_v4 = vmul.f32 %v514_v63, %v470_v7 }
 0x1aa   :  { %v521_v5 = vperm.slane %v512_v0, 0 }
 0x1ac   :  { %v523_v9 = vadd.f32 %v521_v5, %v516_v1  ;;  %v524_v10 = vadd.f32 %v521_v5, %v517_v2  ;;  %v525_v11 = vadd.f32 %v521_v5, %v518_v3  ;;  %v526_v12 = vadd.f32 %v521_v5, %v519_v4 }
 0x1ae   :  { %v527_v13 = vmax.f32 %v523_v9, 0.0  ;;  %v528_v14 = vmax.f32 %v524_v10, 0.0  ;;  %v529_v15 = vmax.f32 %v525_v11, 0.0  ;;  %v530_v16 = vmax.f32 %v526_v12, 0.0 }
 0x1b0   :  { %532 = vst.msk [vmem:[%s908_s7] sm:$0xff] %vm531_vm10, %v527_v13 }
 0x1b1   :  { %533 = vst.msk [vmem:[%s908_s7 + $0x8] sm:$0xff] %vm531_vm10, %v528_v14 }
 0x1b2   :  { %534 = vst.msk [vmem:[%s908_s7 + $0x10] sm:$0xff] %vm531_vm10, %v529_v15 }
 0x1b3   :  { %535 = vst.msk [vmem:[%s908_s7 + $0x18] sm:$0xff] %vm531_vm10, %v530_v16 }

</bundles_post_ra>
